<compile_context>
chip_gen: v6e
topology: v6e:2x2x1
jax: 0.10.0
libtpu: 0.0.40
codegen_flags: <defaults>
</compile_context>

<pallas_src>
import functools

import jax
import jax.numpy as jnp
from jax.experimental import pallas as pl
from jax.experimental.pallas import tpu as pltpu


def _groupnorm1_kernel(x_ref, g_ref, b_ref, o_ref, *, eps, inv_n):
    # x_ref/o_ref: (TN, C*HW) lane-dense block (TN samples per grid step).
    # g_ref/b_ref: (1, C*HW) per-channel affine pre-broadcast over spatial.
    xf = x_ref[...].astype(jnp.float32)
    # Fused single pass: per-row (per-sample) sum and sum-of-squares, f32 accum.
    s1 = jnp.sum(xf, axis=1, keepdims=True)
    s2 = jnp.sum(xf * xf, axis=1, keepdims=True)
    mean = s1 * inv_n
    var = jnp.maximum(s2 * inv_n - mean * mean, 0.0)   # biased variance (GroupNorm)
    inv = jax.lax.rsqrt(var + eps)                      # EUP op — off the VALU slot
    y = (xf - mean) * inv
    o_ref[...] = (y * g_ref[...] + b_ref[...]).astype(o_ref.dtype)


def groupnorm1(x_nchw, gamma, beta, eps=1e-5):
    """GroupNorm(num_groups=1, num_channels=C) on an NCHW tensor via Pallas."""
    N, C, H, W = x_nchw.shape
    HW = H * W
    CHW = C * HW

    # Lane-dense flattened layout: one sample = one row of length C*HW.
    x2 = x_nchw.reshape(N, CHW)
    g2 = jnp.repeat(gamma.astype(jnp.float32), HW).reshape(1, CHW)
    b2 = jnp.repeat(beta.astype(jnp.float32), HW).reshape(1, CHW)

    # Batch-tile size: amortize per-grid-step overhead with ~4 MiB (f32) blocks.
    # Double-buffered in+out (2*4 + 2*4 MiB) stays under the 32 MiB scoped-VMEM
    # budget on every current chip.
    bytes_per_row = CHW * 4
    budget = 4 * 1024 * 1024
    tn = max(1, budget // bytes_per_row)
    if tn >= N:
        tn = N                       # whole batch in one block (block dim == array dim)
    else:
        tn = (tn // 8) * 8           # sublane-aligned tiles when tiling the batch
        if tn == 0:
            tn = N                   # tiny batch: fall back to whole-batch block
    grid = (pl.cdiv(N, tn),)

    kernel = functools.partial(_groupnorm1_kernel, eps=eps, inv_n=1.0 / CHW)

    y2 = pl.pallas_call(
        kernel,
        out_shape=jax.ShapeDtypeStruct((N, CHW), x_nchw.dtype),
        grid_spec=pltpu.PrefetchScalarGridSpec(
            num_scalar_prefetch=0,
            grid=grid,
            in_specs=[
                pl.BlockSpec((tn, CHW), lambda i: (i, 0)),
                pl.BlockSpec((1, CHW), lambda i: (0, 0)),
                pl.BlockSpec((1, CHW), lambda i: (0, 0)),
            ],
            out_specs=pl.BlockSpec((tn, CHW), lambda i: (i, 0)),
        ),
        compiler_params=pltpu.CompilerParams(
            dimension_semantics=("parallel",),
            vmem_limit_bytes=32 * 1024 * 1024,
        ),
    )(x2, g2, b2)
    return y2.reshape(N, C, H, W)


def prenorm(x_nchw, gamma, beta, fn=lambda y: y, eps=1e-5):
    """PreNorm.forward: fn(GroupNorm(1, C)(x))."""
    return fn(groupnorm1(x_nchw, gamma, beta, eps=eps))


if __name__ == "__main__":
    key = jax.random.PRNGKey(0)
    N, C, H, W = 2, 4, 16, 16

    x = jax.random.normal(key, (N, C, H, W), dtype=jnp.float32)
    # PyTorch GroupNorm init is weight=1, bias=0; perturb so affine is exercised.
    gamma = jnp.ones((C,), jnp.float32) + 0.1 * jnp.arange(C, dtype=jnp.float32)
    beta = 0.05 * jnp.arange(C, dtype=jnp.float32)

    out = prenorm(x, gamma, beta, fn=lambda y: y)
    out = jax.block_until_ready(out)

    # Reference check (plain JAX GroupNorm(1, C)).
    mean = jnp.mean(x, axis=(1, 2, 3), keepdims=True)
    var = jnp.mean((x - mean) ** 2, axis=(1, 2, 3), keepdims=True)
    ref = (x - mean) * jax.lax.rsqrt(var + 1e-5)
    ref = ref * gamma.reshape(1, C, 1, 1) + beta.reshape(1, C, 1, 1)
    assert out.shape == (N, C, H, W)
    assert jnp.allclose(out, ref, atol=1e-4, rtol=1e-4)

    print("KERNEL_OK")
</pallas_src>

<mosaic_0001>
module attributes {stable_mosaic.version = 11 : i64} {
  func.func @_groupnorm1_kernel(%arg0: i32, %arg1: memref<2x1024xf32, #tpu.memory_space<vmem>>, %arg2: memref<1x1024xf32, #tpu.memory_space<vmem>>, %arg3: memref<1x1024xf32, #tpu.memory_space<vmem>>, %arg4: memref<2x1024xf32, #tpu.memory_space<vmem>>) attributes {dimension_semantics = [#tpu.dimension_semantics<parallel>], iteration_bounds = array<i64: 1>, scalar_prefetch = 0 : i64, scratch_operands = 0 : i64, tpu.core_type = #tpu.core_type<tc>, window_params = [{transform_indices = @transform_0, window_bounds = array<i64: 2, 1024>}, {pipeline_mode = #tpu.pipeline_mode<synchronous>, transform_indices = @transform_1, window_bounds = array<i64: 1, 1024>}, {pipeline_mode = #tpu.pipeline_mode<synchronous>, transform_indices = @transform_2, window_bounds = array<i64: 1, 1024>}, {transform_indices = @transform_3, window_bounds = array<i64: 2, 1024>}]} {
    %c0 = arith.constant 0 : index
    %c0_0 = arith.constant 0 : index
    %0 = vector.load %arg1[%c0, %c0_0] : memref<2x1024xf32, #tpu.memory_space<vmem>>, vector<2x1024xf32>
    %cst = arith.constant dense<0.000000e+00> : vector<2xf32>
    %1 = vector.multi_reduction <add>, %0, %cst [1] : vector<2x1024xf32> to vector<2xf32>
    %2 = vector.shape_cast %1 : vector<2xf32> to vector<2x1xf32>
    %3 = arith.mulf %0, %0 : vector<2x1024xf32>
    %cst_1 = arith.constant dense<0.000000e+00> : vector<2xf32>
    %4 = vector.multi_reduction <add>, %3, %cst_1 [1] : vector<2x1024xf32> to vector<2xf32>
    %5 = vector.shape_cast %4 : vector<2xf32> to vector<2x1xf32>
    %cst_2 = arith.constant 9.765625E-4 : f32
    %6 = vector.broadcast %cst_2 : f32 to vector<2x1xf32>
    %7 = arith.mulf %2, %6 : vector<2x1xf32>
    %cst_3 = arith.constant 9.765625E-4 : f32
    %8 = vector.broadcast %cst_3 : f32 to vector<2x1xf32>
    %9 = arith.mulf %5, %8 : vector<2x1xf32>
    %10 = arith.mulf %7, %7 : vector<2x1xf32>
    %11 = arith.subf %9, %10 : vector<2x1xf32>
    %cst_4 = arith.constant 0.000000e+00 : f32
    %12 = vector.broadcast %cst_4 : f32 to vector<2x1xf32>
    %13 = arith.maximumf %11, %12 : vector<2x1xf32>
    %cst_5 = arith.constant 9.99999974E-6 : f32
    %14 = vector.broadcast %cst_5 : f32 to vector<2x1xf32>
    %15 = arith.addf %13, %14 : vector<2x1xf32>
    %16 = math.rsqrt %15 : vector<2x1xf32>
    %17 = vector.broadcast %7 : vector<2x1xf32> to vector<2x1024xf32>
    %18 = arith.subf %0, %17 : vector<2x1024xf32>
    %19 = vector.broadcast %16 : vector<2x1xf32> to vector<2x1024xf32>
    %20 = arith.mulf %18, %19 : vector<2x1024xf32>
    %c0_6 = arith.constant 0 : index
    %c0_7 = arith.constant 0 : index
    %21 = vector.load %arg2[%c0_6, %c0_7] : memref<1x1024xf32, #tpu.memory_space<vmem>>, vector<1x1024xf32>
    %22 = vector.broadcast %21 : vector<1x1024xf32> to vector<2x1024xf32>
    %23 = arith.mulf %20, %22 : vector<2x1024xf32>
    %c0_8 = arith.constant 0 : index
    %c0_9 = arith.constant 0 : index
    %24 = vector.load %arg3[%c0_8, %c0_9] : memref<1x1024xf32, #tpu.memory_space<vmem>>, vector<1x1024xf32>
    %25 = vector.broadcast %24 : vector<1x1024xf32> to vector<2x1024xf32>
    %26 = arith.addf %23, %25 : vector<2x1024xf32>
    %c0_10 = arith.constant 0 : index
    %c0_11 = arith.constant 0 : index
    %27 = vector.load %arg4[%c0_10, %c0_11] : memref<2x1024xf32, #tpu.memory_space<vmem>>, vector<2x1024xf32>
    tpu.vector_store %arg4[%c0_10, %c0_11], %26 {strides = array<i32>} : memref<2x1024xf32, #tpu.memory_space<vmem>>, vector<2x1024xf32>,
    return
  }
  func.func @transform_0(%arg0: i32) -> (i32, i32) {
    %c0_i32 = arith.constant 0 : i32
    %c0_i32_0 = arith.constant 0 : i32
    return %arg0, %c0_i32 : i32, i32
  }
  func.func @transform_1(%arg0: i32) -> (i32, i32) {
    %c0_i32 = arith.constant 0 : i32
    %c0_i32_0 = arith.constant 0 : i32
    %c0_i32_1 = arith.constant 0 : i32
    return %c0_i32, %c0_i32_0 : i32, i32
  }
  func.func @transform_2(%arg0: i32) -> (i32, i32) {
    %c0_i32 = arith.constant 0 : i32
    %c0_i32_0 = arith.constant 0 : i32
    %c0_i32_1 = arith.constant 0 : i32
    return %c0_i32, %c0_i32_0 : i32, i32
  }
  func.func @transform_3(%arg0: i32) -> (i32, i32) {
    %c0_i32 = arith.constant 0 : i32
    %c0_i32_0 = arith.constant 0 : i32
    return %arg0, %c0_i32 : i32, i32
  }
}

</mosaic_0001>

<bundles_post_ra>
// kernel: tpu_custom_call.1
= control target key start
LH: loop header
LB: loop body
LE: loop exit
PB: predicated region body
PF: predicated region fallthrough
CT: control target
= control target key end

     0   :  { %8 = vsyncpa [#allocation3], 0  ;;  %s564_s0 = inlined_call_operand.hbm [shape: f32[2,1024], index: 0, kind: input, shape index: {}]   ;;  %s565_s1 = inlined_call_operand.hbm [shape: f32[1,1024], index: 1, kind: input, shape index: {}]   ;;  %s566_s2 = inlined_call_operand.hbm [shape: f32[1,1024], index: 2, kind: input, shape index: {}]   ;;  %s567_s3 = inlined_call_operand.hbm [shape: f32[2,1024], index: 3, kind: output, shape index: {}]  }
   0x1   :  { %9 = vsyncpa [#allocation6], 0 }
   0x2   :  { %10 = vsyncpa [#allocation4], 0  ;;  %s464_s12 = smov [#allocation5]   ;;  %s465_s14 = smov [#allocation2]  }
   0x3   :  { %s27_s13 = sshll.u32 %s464_s12, 4  ;;  %s17_s15 = sshll.u32 %s465_s14, 4  ;;  %s28_s13 = int_to_ptr.vmem [resolvable:$true] %s27_s13  ;;  %s18_s15 = int_to_ptr.vmem [resolvable:$true] %s17_s15 }
   0x4   :  { %s386_s16 = scalar_lea.vmem %s28_s13, 128  ;;  %p391_p1 = scmp.lt.s32.totalorder %s28_s13, %s28_s13 }
   0x5   :  { %p387_p0 = scmp.ne.s32.totalorder %s28_s13, %s386_s16  ;;  %p392_p2 = scmp.lt.s32.totalorder %s386_s16, %s386_s16 }
   0x7   :  { %p393_p3 = por %p392_p2, %p391_p1 }
   0x9   :  { %p394_p4 = pnand %p393_p3, %p387_p0 }
   0xb   :  { %397 = shalt.err (!%p394_p4)
}
   0xc   :  { %30 = dma.hbm_to_vmem [thread:$0]  %s565_s1, 128, %s28_s13, [#allocation6]  }
   0xd   :  { %s406_s19 = scalar_lea.vmem %s18_s15, 256  ;;  %p411_p6 = scmp.lt.s32.totalorder %s18_s15, %s18_s15 }
   0xe   :  { %p407_p5 = scmp.ne.s32.totalorder %s18_s15, %s406_s19  ;;  %p412_p7 = scmp.lt.s32.totalorder %s406_s19, %s406_s19 }
  0x10   :  { %p413_p8 = por %p412_p7, %p411_p6 }
  0x12   :  { %p414_p9 = pnand %p413_p8, %p407_p5 }
  0x14   :  { %417 = shalt.err (!%p414_p9)
}
  0x15   :  { %20 = dma.hbm_to_vmem [thread:$0]  %s564_s0, 256, %s18_s15, [#allocation3]  }
  0x16   :  { %s466_s22 = smov [#allocation7]  }
  0x17   :  { %s37_s23 = sshll.u32 %s466_s22, 4  ;;  %s38_s23 = int_to_ptr.vmem [resolvable:$true] %s37_s23 }
  0x18   :  { %s426_s24 = scalar_lea.vmem %s38_s23, 128  ;;  %p431_p11 = scmp.lt.s32.totalorder %s38_s23, %s38_s23 }
  0x19   :  { %p427_p10 = scmp.ne.s32.totalorder %s38_s23, %s426_s24  ;;  %p432_p12 = scmp.lt.s32.totalorder %s426_s24, %s426_s24 }
  0x1b   :  { %p433_p13 = por %p432_p12, %p431_p11 }
  0x1d   :  { %p434_p0 = pnand %p433_p13, %p427_p10 }
  0x1f   :  { %437 = shalt.err (!%p434_p0)
}
  0x20   :  { %40 = dma.hbm_to_vmem [thread:$0]  %s566_s2, 128, %s38_s23, [#allocation6]  }
  0x21   :  { %458 = dma.done.wait [#allocation3], 256  }
  0x22   :  { %459 = vsyncadd [#allocation3], 4294967040 }
  0x23   :  { %460 = dma.done.wait [#allocation6], 256  }
  0x24   :  { %461 = vsyncadd [#allocation6], 4294967040  ;;  %v58_v0 = vlaneseq  ;;  %v467_v1 = vmov 1983009808   ;;  %v504_v6 = vld [vmem:[#allocation2] sm:$0xff]  ;;  %v506_v7 = vld [vmem:[#allocation2 + $0x8] sm:$0xff] }
  0x25   :  { %v56_v2 = vunpack.c.l.s4 %v467_v1  ;;  %v54_v8 = vcombine.high %v504_v6, %v504_v6  ;;  %vm96_vm0 = vcmask 1041408   ;;  %v71_v10 = vcombine.high %v506_v7, %v506_v7  ;;  %s469_s0 = smov [#allocation8]  }
  0x26   :  { %v499_v3 = vshrl.u32 %v58_v0, 7  ;;  %v114_v11 = vmul.f32 %v504_v6, %v504_v6  ;;  %v115_v16 = vmul.f32 %v506_v7, %v506_v7  ;;  %v206_v0 = vld [vmem:[#allocation5] sm:$0xff]  ;;  %s358_s2 = sshll.u32 %s469_s0, 4  ;;  %s359_s2 = int_to_ptr.vmem [resolvable:$true] %s358_s2 }
  0x27   :  { %v57_v4 = vunpack.c.0.s8 %v56_v2  ;;  %s438_s26 = scalar_lea.vmem %s359_s2, 256  ;;  %p443_p2 = scmp.lt.s32.totalorder %s359_s2, %s359_s2 }
  0x28   :  { %v118_v17 = vcombine.high %v114_v11, %v114_v11  ;;  %v135_v28 = vcombine.high %v115_v16, %v115_v16  ;;  %v210_v60 = vsub.s32 0, %v499_v3  ;;  %v214_v61 = vsub.s32 1, %v499_v3  ;;  %p439_p1 = scmp.ne.s32.totalorder %s359_s2, %s438_s26  ;;  %p444_p3 = scmp.lt.s32.totalorder %s438_s26, %s438_s26 }
  0x29   :  { %v502_v5 = vsub.s32 %v57_v4, %v499_v3  ;;  %v218_v62 = vsub.s32 2, %v499_v3  ;;  %v222_v63 = vsub.s32 3, %v499_v3  ;;  %v226_v1 = vsub.s32 4, %v499_v3 }
  0x2a   :  { %v230_v2 = vsub.s32 5, %v499_v3  ;;  %v234_v4 = vsub.s32 6, %v499_v3  ;;  %p445_p4 = por %p444_p3, %p443_p2 }
  0x2b   :  { %v61_v9 = vrot.slane %v504_v6, %v502_v5  ;;  %v68_v12 = vrot.slane %v54_v8, %v502_v5  ;;  %v78_v14 = vrot.slane %v506_v7, %v502_v5  ;;  %v125_v18 = vrot.slane %v114_v11, %v502_v5 }
  0x2c   :  { %v85_v22 = vrot.slane %v71_v10, %v502_v5  ;;  %v132_v24 = vrot.slane %v118_v17, %v502_v5  ;;  %v142_v31 = vrot.slane %v115_v16, %v502_v5  ;;  %v149_v40 = vrot.slane %v135_v28, %v502_v5  ;;  %v278_v17 = vld [vmem:[#allocation7] sm:$0xff]  ;;  %p446_p5 = pnand %p445_p4, %p439_p1 }
  0x2d   :  { %v69_v13 = vcombine.high %v61_v9, %v61_v9  ;;  %v97_v15 = vsel %vm96_vm0, %v61_v9, 0.0  ;;  %v70_v19 = vcombine.high %v68_v12, %v68_v12  ;;  %v100_v21 = vsel %vm96_vm0, %v68_v12, 0.0 }
  0x2e   :  { %v86_v25 = vcombine.high %v78_v14, %v78_v14  ;;  %v133_v27 = vcombine.high %v125_v18, %v125_v18  ;;  %v134_v30 = vcombine.high %v132_v24, %v132_v24  ;;  %v160_v32 = vsel %vm96_vm0, %v125_v18, 0.0 }
  0x2f   :  { %v98_v20 = vsel %vm96_vm0, %v69_v13, 0.0  ;;  %v102_v26 = vsel %vm96_vm0, %v70_v19, 0.0  ;;  %v104_v33 = vsel %vm96_vm0, %v78_v14, 0.0  ;;  %v163_v35 = vsel %vm96_vm0, %v132_v24, 0.0 }
  0x30   :  { %v99_v23 = vadd.f32 %v98_v20, %v97_v15  ;;  %v161_v34 = vsel %vm96_vm0, %v133_v27, 0.0  ;;  %v87_v36 = vcombine.high %v85_v22, %v85_v22  ;;  %v106_v39 = vsel %vm96_vm0, %v86_v25, 0.0 }
  0x31   :  { %v162_v38 = vadd.f32 %v161_v34, %v160_v32  ;;  %v150_v41 = vcombine.high %v142_v31, %v142_v31  ;;  %v165_v42 = vsel %vm96_vm0, %v134_v30, 0.0  ;;  %v108_v45 = vsel %vm96_vm0, %v85_v22, 0.0 }
  0x32   :  { %v101_v29 = vadd.f32 %v100_v21, %v99_v23  ;;  %v167_v46 = vsel %vm96_vm0, %v142_v31, 0.0  ;;  %v110_v49 = vsel %vm96_vm0, %v87_v36, 0.0  ;;  %v151_v50 = vcombine.high %v149_v40, %v149_v40 }
  0x33   :  { %v164_v44 = vadd.f32 %v163_v35, %v162_v38  ;;  %v169_v51 = vsel %vm96_vm0, %v150_v41, 0.0  ;;  %v171_v54 = vsel %vm96_vm0, %v149_v40, 0.0  ;;  %v238_v8 = vsub.s32 7, %v499_v3 }
  0x34   :  { %v103_v37 = vadd.f32 %v102_v26, %v101_v29  ;;  %v173_v57 = vsel %vm96_vm0, %v151_v50, 0.0  ;;  %v211_v9 = vrot.slane %v206_v0, %v210_v60  ;;  %v215_v10 = vrot.slane %v206_v0, %v214_v61 }
  0x35   :  { %v166_v48 = vadd.f32 %v165_v42, %v164_v44  ;;  %v219_v11 = vrot.slane %v206_v0, %v218_v62  ;;  %v223_v12 = vrot.slane %v206_v0, %v222_v63  ;;  %v227_v13 = vrot.slane %v206_v0, %v226_v1 }
  0x36   :  { %v105_v43 = vadd.f32 %v104_v33, %v103_v37  ;;  %v231_v14 = vrot.slane %v206_v0, %v230_v2  ;;  %v235_v15 = vrot.slane %v206_v0, %v234_v4  ;;  %v239_v16 = vrot.slane %v206_v0, %v238_v8 }
  0x37   :  { %v168_v53 = vadd.f32 %v167_v46, %v166_v48  ;;  %v240_v18 = vcombine.low %v211_v9, %v215_v10  ;;  %v241_v19 = vcombine.low %v219_v11, %v223_v12  ;;  %v283_v20 = vrot.slane %v278_v17, %v210_v60 }
  0x38   :  { %v107_v47 = vadd.f32 %v106_v39, %v105_v43  ;;  %v287_v21 = vrot.slane %v278_v17, %v214_v61  ;;  %v257_v22 = vcombine.low %v227_v13, %v231_v14  ;;  %v258_v23 = vcombine.low %v235_v15, %v239_v16 }
  0x39   :  { %v170_v56 = vadd.f32 %v169_v51, %v168_v53  ;;  %v291_v24 = vrot.slane %v278_v17, %v218_v62  ;;  %v295_v25 = vrot.slane %v278_v17, %v222_v63  ;;  %v248_v26 = vrot.slane %v240_v18, %v502_v5 }
  0x3a   :  { %v109_v52 = vadd.f32 %v108_v45, %v107_v47  ;;  %v255_v27 = vrot.slane %v241_v19, %v502_v5  ;;  %v299_v28 = vrot.slane %v278_v17, %v226_v1  ;;  %v303_v29 = vrot.slane %v278_v17, %v230_v2 }
  0x3b   :  { %v172_v58 = vadd.f32 %v171_v54, %v170_v56  ;;  %v265_v30 = vrot.slane %v257_v22, %v502_v5  ;;  %v272_v31 = vrot.slane %v258_v23, %v502_v5  ;;  %v307_v32 = vrot.slane %v278_v17, %v234_v4 }
  0x3c   :  { %v111_v55 = vadd.f32 %v110_v49, %v109_v52  ;;  %v311_v33 = vrot.slane %v278_v17, %v238_v8  ;;  %v256_v34 = vcombine.low %v248_v26, %v255_v27  ;;  %v312_v35 = vcombine.low %v283_v20, %v287_v21 }
  0x3d   :  { %v174_v59 = vadd.f32 %v173_v57, %v172_v58  ;;  %v313_v36 = vcombine.low %v291_v24, %v295_v25  ;;  %v329_v37 = vcombine.low %v299_v28, %v303_v29  ;;  %v273_v38 = vcombine.low %v265_v30, %v272_v31 }
  0x3e   :  { %112 = vadd.xlane.f32.xlu0 %v111_v55  ;;  %v330_v39 = vcombine.low %v307_v32, %v311_v33  ;;  %v320_v40 = vrot.slane %v312_v35, %v502_v5  ;;  %v468_v53 = vmov 269488144  }
  0x3f   :  { %v327_v41 = vrot.slane %v313_v36, %v502_v5  ;;  %v337_v42 = vrot.slane %v329_v37, %v502_v5  ;;  %v186_v54 = vunpack.c.l.s4 %v468_v53 }
  0x40   :  { %v344_v43 = vrot.slane %v330_v39, %v502_v5 }
  0x41   :  { %v328_v44 = vcombine.low %v320_v40, %v327_v41  ;;  %v187_v56 = vunpack.c.0.s8 %v186_v54 }
  0x42   :  { %175 = vadd.xlane.f32.xlu0 %v174_v59  ;;  %v345_v45 = vcombine.low %v337_v42, %v344_v43 }
  0x43   :  { %v190_v57 = vsub.s32 %v187_v56, %v499_v3 }
  0xc7   :  { %v113_v46 = vpop.xlane.xlu0 %112 }
  0xc8   :  { %v177_v47 = vmul.f32 0.0009765625, %v113_v46 }
  0xca   :  { %v179_v49 = vmul.f32 %v177_v47, %v177_v47  ;;  %v191_v58 = vrot.slane %v177_v47, %v190_v57 }
  0xcb   :  { %v176_v48 = vpop.xlane.xlu0 %175 }
  0xcc   :  { %v178_v50 = vmul.f32 0.0009765625, %v176_v48  ;;  %v193_v5 = vsub.f32 %v504_v6, %v191_v58  ;;  %v194_v60 = vsub.f32 %v506_v7, %v191_v58 }
  0xce   :  { %v180_v51 = vsub.f32 %v178_v50, %v179_v49 }
  0xd0   :  { %v181_v52 = vmax.f32 %v180_v51, 0.0 }
  0xd2   :  { %v182_v55 = vadd.f32 1e-05, %v181_v52 }
  0xd4   :  { %376 = vrsqrt.f32 %v182_v55 }
  0xe1   :  { %v377_v59 = vpop.eup %376 }
  0xe2   :  { %v202_v61 = vrot.slane %v377_v59, %v190_v57 }
  0xe4   :  { %v204_v62 = vmul.f32 %v202_v61, %v193_v5  ;;  %v205_v63 = vmul.f32 %v202_v61, %v194_v60 }
  0xe6   :  { %v276_v0 = vmul.f32 %v256_v34, %v204_v62  ;;  %v277_v1 = vmul.f32 %v273_v38, %v205_v63 }
  0xe8   :  { %v348_v2 = vadd.f32 %v328_v44, %v276_v0  ;;  %v349_v4 = vadd.f32 %v345_v45, %v277_v1 }
  0xea   :  { %350 = vst [vmem:[#allocation8] sm:$0xff] %v348_v2  ;;  %351 = vst [vmem:[#allocation8 + $0x8] sm:$0xff] %v349_v4 }
  0xeb   :  { %449 = shalt.err (!%p446_p5)
}
  0xec   :  { %361 = dma.vmem_to_hbm [thread:$0]  %s359_s2, 256, %s567_s3, [#allocation4]  }
  0xed   :  { %462 = dma.done.wait [#allocation4], 256  }
  0xee   :  { %463 = vsyncadd [#allocation4], 4294967040 }
  0xef   :  { %365 = vsyncpa [#allocation3], 1 }
  0xf0   :  { %366 = vsyncpa [#allocation6], 1 }
  0xf1   :  { %367 = vsyncpa [#allocation4], 1 }

</bundles_post_ra>
